<compile_context>
chip_gen: v5e
topology: v5e:2x2
jax: 0.10.0
libtpu: 0.0.40
codegen_flags: <defaults>
</compile_context>

<pallas_src>
import jax
import jax.numpy as jnp
from jax import lax
from jax.experimental import pallas as pl
from jax.experimental.pallas import tpu as pltpu

_NEG_BIG = -1e30      # masks padded class columns (safer than -inf for exp math)
_MIN_STEPS = 4        # >= 2*num_cores on v7x; also restores pipeline overlap


def mycls_kernel(x_ref, w_ref, b_ref, out_ref):
    # x_ref : (TB, C, HW) f32   NCHW-flat activation tile (HW lane-dense)
    # w_ref : (C,  Np)    f32   classifier weight, padded columns are zero
    # b_ref : (1,  Np)    f32   classifier bias, padded columns are -1e30
    # out_ref: (TB, 2)    f32   [:, 0] = top-1 index (float), [:, 1] = top-1 prob
    x = x_ref[...]
    tb, _, hw = x.shape
    pooled = jnp.sum(x, axis=-1) * (1.0 / hw)                 # (TB, C) GAP, XLU reduce

    logits = jnp.dot(pooled, w_ref[...],
                     preferred_element_type=jnp.float32) + b_ref[...]   # (TB, Np)

    # Top-1 without materializing the full softmax:
    #   index = argmax(logits)                (softmax is monotone)
    #   score = exp(m - m) / sum(exp(l - m))  = 1 / denom
    m = jnp.max(logits, axis=-1, keepdims=True)               # (TB, 1)
    e = jnp.exp(logits - m)                                    # padded cols -> 0
    denom = jnp.sum(e, axis=-1, keepdims=True)                 # (TB, 1)
    score = pl.reciprocal(denom, approx=False)                 # exact, keeps 1e-5 tol

    n_pad = logits.shape[-1]
    iota = lax.broadcasted_iota(jnp.int32, logits.shape, 1)
    idx = jnp.min(jnp.where(logits == m, iota, n_pad),
                  axis=-1, keepdims=True)                      # first argmax (ties -> smallest)

    # Single (TB, 2) store: column 0 = index, column 1 = score.
    col = lax.broadcasted_iota(jnp.int32, (tb, 2), 1)
    out_ref[...] = jnp.where(col == 0, idx.astype(jnp.float32), score)


def _round_up(v, m):
    return ((v + m - 1) // m) * m


def _vmem_capacity_bytes():
    try:
        cap = getattr(pltpu.get_tpu_info(), "vmem_capacity_bytes", None)
        if cap:
            return int(cap)
    except Exception:
        pass
    return 64 * 1024 * 1024   # conservative default (v7x per-TC)


def mycls_forward(x_nchw, w, b):
    """x_nchw: (B, C, H, W) f32; w: (C, N); b: (1, N). Returns (B, 2):
       [:, 0] = argmax class id (float), [:, 1] = top-1 softmax probability."""
    B, C, H, W = x_nchw.shape
    N = w.shape[1]
    HW = H * W

    # Free, contiguous view of NCHW -> (B, C, HW): channels on sublanes,
    # pooled (HW) axis lane-dense. No extra HBM round-trip for x.
    x3 = x_nchw.reshape(B, C, HW)

    # Pad the class axis to a multiple of 128 so the logits/softmax path is lane-dense.
    Np = max(128, _round_up(N, 128))
    w_p = jnp.pad(w, ((0, 0), (0, Np - N)))                              # zeros
    b_p = jnp.pad(b, ((0, 0), (0, Np - N)), constant_values=_NEG_BIG)    # mask padded classes

    # ---- Generation-aware VMEM / tile budgeting -----------------------------
    vmem_cap = _vmem_capacity_bytes()
    usable = int(vmem_cap * 0.75)                       # headroom for compiler scratch
    weight_resident = C * Np * 4 + Np * 4               # single-buffered w + b
    x_budget = max(1 << 20, usable - weight_resident - (1 << 20))
    target_tile = min(16 * 1024 * 1024, x_budget // 2)  # x is double-buffered

    row_bytes = C * HW * 4
    tb_vmem = max(1, target_tile // row_bytes)          # largest TB that fits VMEM
    tb_steps = -(-B // _MIN_STEPS)                      # cap TB so grid >= _MIN_STEPS
    tb = max(1, min(tb_vmem, tb_steps))
    TB = max(8, (tb // 8) * 8)                          # sublane-aligned (TB, 2) output

    # Enforce the minimum step count only when the zero-padding it adds is cheap.
    steps_real = -(-B // TB)
    steps = max(_MIN_STEPS, steps_real)
    pad_bytes = (TB * steps - B) * row_bytes
    if steps > steps_real and pad_bytes > max(2 * B * row_bytes, 8 << 20):
        steps = steps_real
    Bp = TB * steps
    if Bp > B:
        x3 = jnp.pad(x3, ((0, Bp - B), (0, 0), (0, 0)))   # zero rows -> finite logits

    grid = (Bp // TB,)

    cost = pl.CostEstimate(
        flops=Bp * C * HW + 2 * Bp * C * Np + 6 * Bp * Np,
        transcendentals=Bp * Np,
        bytes_accessed=Bp * C * HW * 4 + C * Np * 4 + Np * 4 + Bp * 2 * 4,
    )

    def _build(single_buffer_weights):
        if single_buffer_weights:
            # w/b never change across grid steps -> one buffer, frees VMEM for x tiles.
            w_spec = pl.BlockSpec((C, Np), lambda i: (0, 0),
                                  pipeline_mode=pl.Buffered(1))
            b_spec = pl.BlockSpec((1, Np), lambda i: (0, 0),
                                  pipeline_mode=pl.Buffered(1))
            resident = weight_resident
        else:
            w_spec = pl.BlockSpec((C, Np), lambda i: (0, 0))
            b_spec = pl.BlockSpec((1, Np), lambda i: (0, 0))
            resident = 2 * weight_resident
        vmem_need = 2 * TB * row_bytes + resident + 2 * TB * 2 * 4
        vmem_limit = min(int(vmem_cap), max(vmem_need + (4 << 20), 16 << 20))
        return pl.pallas_call(
            mycls_kernel,
            out_shape=jax.ShapeDtypeStruct((Bp, 2), jnp.float32),
            grid=grid,
            in_specs=[
                pl.BlockSpec((TB, C, HW), lambda i: (i, 0, 0)),
                w_spec,
                b_spec,
            ],
            out_specs=pl.BlockSpec((TB, 2), lambda i: (i, 0)),
            compiler_params=pltpu.CompilerParams(
                dimension_semantics=("parallel",),
                vmem_limit_bytes=vmem_limit,
            ),
            cost_estimate=cost,
        )

    try:
        out = _build(True)(x3, w_p, b_p)
    except Exception:
        # TODO(synk): drop this fallback once pl.Buffered(1) single-buffered
        # constant operands are confirmed on every deployed JAX/Mosaic version.
        out = _build(False)(x3, w_p, b_p)

    return out[:B]


if __name__ == "__main__":
    # Small shapes consistent with the forward: NCHW image batch, N-way classifier.
    B, C, H, W = 2, 4, 16, 16
    N_CLASSES = 8

    key = jax.random.PRNGKey(0)
    kx, kw, kb = jax.random.split(key, 3)

    x = jax.random.normal(kx, (B, C, H, W), dtype=jnp.float32)
    w = jax.random.normal(kw, (C, N_CLASSES), dtype=jnp.float32) * 0.1
    b = jax.random.normal(kb, (1, N_CLASSES), dtype=jnp.float32) * 0.01

    out = jax.block_until_ready(mycls_forward(x, w, b))

    # Pure-JAX reference of the same forward semantics.
    pooled = jnp.mean(x.reshape(B, C, H * W), axis=-1)
    logits = pooled @ w + b
    probs = jax.nn.softmax(logits, axis=1)
    ref_score = jnp.max(probs, axis=1, keepdims=True)
    ref_idx = jnp.argmax(probs, axis=1, keepdims=True).astype(jnp.float32)
    ref = jnp.concatenate([ref_idx, ref_score], axis=1)

    assert out.shape == (B, 2), out.shape
    assert jnp.allclose(out, ref, atol=1e-5, rtol=1e-5), (out, ref)

    print("KERNEL_OK")
</pallas_src>

<mosaic_0001>
module attributes {stable_mosaic.version = 11 : i64} {
  func.func @mycls_kernel(%arg0: i32, %arg1: memref<8x4x256xf32, #tpu.memory_space<vmem>>, %arg2: memref<4x128xf32, #tpu.memory_space<vmem>>, %arg3: memref<1x128xf32, #tpu.memory_space<vmem>>, %arg4: memref<8x2xf32, #tpu.memory_space<vmem>>) attributes {dimension_semantics = [#tpu.dimension_semantics<parallel>], iteration_bounds = array<i64: 4>, scalar_prefetch = 0 : i64, scratch_operands = 0 : i64, tpu.core_type = #tpu.core_type<tc>, window_params = [{transform_indices = @transform_0, window_bounds = array<i64: 8, 4, 256>}, {pipeline_mode = #tpu.pipeline_mode<synchronous>, transform_indices = @transform_1, window_bounds = array<i64: 4, 128>}, {pipeline_mode = #tpu.pipeline_mode<synchronous>, transform_indices = @transform_2, window_bounds = array<i64: 1, 128>}, {transform_indices = @transform_3, window_bounds = array<i64: 8, 2>}]} {
    %c0 = arith.constant 0 : index
    %c0_0 = arith.constant 0 : index
    %c0_1 = arith.constant 0 : index
    %0 = vector.load %arg1[%c0, %c0_0, %c0_1] : memref<8x4x256xf32, #tpu.memory_space<vmem>>, vector<8x4x256xf32>
    %cst = arith.constant dense<0.000000e+00> : vector<8x4xf32>
    %1 = vector.multi_reduction <add>, %0, %cst [2] : vector<8x4x256xf32> to vector<8x4xf32>
    %cst_2 = arith.constant 3.906250e-03 : f32
    %2 = vector.broadcast %cst_2 : f32 to vector<8x4xf32>
    %3 = arith.mulf %1, %2 : vector<8x4xf32>
    %c0_3 = arith.constant 0 : index
    %c0_4 = arith.constant 0 : index
    %4 = vector.load %arg2[%c0_3, %c0_4] : memref<4x128xf32, #tpu.memory_space<vmem>>, vector<4x128xf32>
    %cst_5 = arith.constant dense<0.000000e+00> : vector<8x128xf32>
    %5 = tpu.matmul %3, %4, %cst_5 {dimension_numbers = #tpu.dot_dimension_numbers<[1], [0], [0], [1], [0, 0, 1, 1], [], []>} : vector<8x4xf32>, vector<4x128xf32>, vector<8x128xf32> -> vector<8x128xf32>
    %c0_6 = arith.constant 0 : index
    %c0_7 = arith.constant 0 : index
    %6 = vector.load %arg3[%c0_6, %c0_7] : memref<1x128xf32, #tpu.memory_space<vmem>>, vector<1x128xf32>
    %7 = vector.broadcast %6 : vector<1x128xf32> to vector<8x128xf32>
    %8 = arith.addf %5, %7 : vector<8x128xf32>
    %cst_8 = arith.constant dense<0xFF800000> : vector<8xf32>
    %9 = vector.multi_reduction <maximumf>, %8, %cst_8 [1] : vector<8x128xf32> to vector<8xf32>
    %10 = vector.shape_cast %9 : vector<8xf32> to vector<8x1xf32>
    %11 = vector.broadcast %10 : vector<8x1xf32> to vector<8x128xf32>
    %12 = arith.subf %8, %11 : vector<8x128xf32>
    %13 = math.exp %12 : vector<8x128xf32>
    %cst_9 = arith.constant dense<0.000000e+00> : vector<8xf32>
    %14 = vector.multi_reduction <add>, %13, %cst_9 [1] : vector<8x128xf32> to vector<8xf32>
    %15 = vector.shape_cast %14 : vector<8xf32> to vector<8x1xf32>
    %16 = tpu.reciprocal %15 : vector<8x1xf32> -> vector<8x1xf32>
    %17 = tpu.iota {dimensions = array<i32: 1>} : vector<8x128xi32>
    %18 = vector.broadcast %10 : vector<8x1xf32> to vector<8x128xf32>
    %19 = arith.cmpf oeq, %8, %18 : vector<8x128xf32>
    %c128_i32 = arith.constant 128 : i32
    %20 = vector.broadcast %c128_i32 : i32 to vector<8x128xi32>
    %21 = arith.select %19, %17, %20 : vector<8x128xi1>, vector<8x128xi32>
    %cst_10 = arith.constant dense<2147483647> : vector<8xi32>
    %22 = vector.multi_reduction <minsi>, %21, %cst_10 [1] : vector<8x128xi32> to vector<8xi32>
    %23 = vector.shape_cast %22 : vector<8xi32> to vector<8x1xi32>
    %24 = tpu.iota {dimensions = array<i32: 1>} : vector<8x2xi32>
    %c0_i32 = arith.constant 0 : i32
    %25 = vector.broadcast %c0_i32 : i32 to vector<8x2xi32>
    %26 = arith.cmpi eq, %24, %25 : vector<8x2xi32>
    %27 = arith.sitofp %23 : vector<8x1xi32> to vector<8x1xf32>
    %28 = vector.shape_cast %27 : vector<8x1xf32> to vector<8x1xf32>
    %29 = vector.broadcast %28 : vector<8x1xf32> to vector<8x2xf32>
    %30 = vector.shape_cast %16 : vector<8x1xf32> to vector<8x1xf32>
    %31 = vector.broadcast %30 : vector<8x1xf32> to vector<8x2xf32>
    %32 = arith.select %26, %29, %31 : vector<8x2xi1>, vector<8x2xf32>
    %c0_11 = arith.constant 0 : index
    %c0_12 = arith.constant 0 : index
    %33 = vector.load %arg4[%c0_11, %c0_12] : memref<8x2xf32, #tpu.memory_space<vmem>>, vector<8x2xf32>
    tpu.vector_store %arg4[%c0_11, %c0_12], %32 {strides = array<i32>} : memref<8x2xf32, #tpu.memory_space<vmem>>, vector<8x2xf32>,
    return
  }
  func.func @transform_0(%arg0: i32) -> (i32, i32, i32) {
    %c0_i32 = arith.constant 0 : i32
    %c0_i32_0 = arith.constant 0 : i32
    %c0_i32_1 = arith.constant 0 : i32
    return %arg0, %c0_i32, %c0_i32_0 : i32, i32, i32
  }
  func.func @transform_1(%arg0: i32) -> (i32, i32) {
    %c0_i32 = arith.constant 0 : i32
    %c0_i32_0 = arith.constant 0 : i32
    %c0_i32_1 = arith.constant 0 : i32
    return %c0_i32, %c0_i32_0 : i32, i32
  }
  func.func @transform_2(%arg0: i32) -> (i32, i32) {
    %c0_i32 = arith.constant 0 : i32
    %c0_i32_0 = arith.constant 0 : i32
    %c0_i32_1 = arith.constant 0 : i32
    return %c0_i32, %c0_i32_0 : i32, i32
  }
  func.func @transform_3(%arg0: i32) -> (i32, i32) {
    %c0_i32 = arith.constant 0 : i32
    %c0_i32_0 = arith.constant 0 : i32
    return %arg0, %c0_i32 : i32, i32
  }
}

module attributes {stable_mosaic.version = 11 : i64} {
  func.func @mycls_kernel(%arg0: i32, %arg1: memref<8x4x256xf32, #tpu.memory_space<vmem>>, %arg2: memref<4x128xf32, #tpu.memory_space<vmem>>, %arg3: memref<1x128xf32, #tpu.memory_space<vmem>>, %arg4: memref<8x2xf32, #tpu.memory_space<vmem>>) attributes {dimension_semantics = [#tpu.dimension_semantics<parallel>], iteration_bounds = array<i64: 4>, scalar_prefetch = 0 : i64, scratch_operands = 0 : i64, tpu.core_type = #tpu.core_type<tc>, window_params = [{transform_indices = @transform_0, window_bounds = array<i64: 8, 4, 256>}, {pipeline_mode = #tpu.pipeline_mode<synchronous>, transform_indices = @transform_1, window_bounds = array<i64: 4, 128>}, {pipeline_mode = #tpu.pipeline_mode<synchronous>, transform_indices = @transform_2, window_bounds = array<i64: 1, 128>}, {transform_indices = @transform_3, window_bounds = array<i64: 8, 2>}]} {
    %c0 = arith.constant 0 : index
    %c0_0 = arith.constant 0 : index
    %c0_1 = arith.constant 0 : index
    %0 = vector.load %arg1[%c0, %c0_0, %c0_1] : memref<8x4x256xf32, #tpu.memory_space<vmem>>, vector<8x4x256xf32>
    %cst = arith.constant dense<0.000000e+00> : vector<8x4xf32>
    %1 = vector.multi_reduction <add>, %0, %cst [2] : vector<8x4x256xf32> to vector<8x4xf32>
    %cst_2 = arith.constant 3.906250e-03 : f32
    %2 = vector.broadcast %cst_2 : f32 to vector<8x4xf32>
    %3 = arith.mulf %1, %2 : vector<8x4xf32>
    %c0_3 = arith.constant 0 : index
    %c0_4 = arith.constant 0 : index
    %4 = vector.load %arg2[%c0_3, %c0_4] : memref<4x128xf32, #tpu.memory_space<vmem>>, vector<4x128xf32>
    %cst_5 = arith.constant dense<0.000000e+00> : vector<8x128xf32>
    %5 = tpu.matmul %3, %4, %cst_5 {dimension_numbers = #tpu.dot_dimension_numbers<[1], [0], [0], [1], [0, 0, 1, 1], [], []>} : vector<8x4xf32>, vector<4x128xf32>, vector<8x128xf32> -> vector<8x128xf32>
    %c0_6 = arith.constant 0 : index
    %c0_7 = arith.constant 0 : index
    %6 = vector.load %arg3[%c0_6, %c0_7] : memref<1x128xf32, #tpu.memory_space<vmem>>, vector<1x128xf32>
    %7 = vector.broadcast %6 : vector<1x128xf32> to vector<8x128xf32>
    %8 = arith.addf %5, %7 : vector<8x128xf32>
    %cst_8 = arith.constant dense<0xFF800000> : vector<8xf32>
    %9 = vector.multi_reduction <maximumf>, %8, %cst_8 [1] : vector<8x128xf32> to vector<8xf32>
    %10 = vector.shape_cast %9 : vector<8xf32> to vector<8x1xf32>
    %11 = vector.broadcast %10 : vector<8x1xf32> to vector<8x128xf32>
    %12 = arith.subf %8, %11 : vector<8x128xf32>
    %13 = math.exp %12 : vector<8x128xf32>
    %cst_9 = arith.constant dense<0.000000e+00> : vector<8xf32>
    %14 = vector.multi_reduction <add>, %13, %cst_9 [1] : vector<8x128xf32> to vector<8xf32>
    %15 = vector.shape_cast %14 : vector<8xf32> to vector<8x1xf32>
    %16 = tpu.reciprocal %15 : vector<8x1xf32> -> vector<8x1xf32>
    %17 = tpu.iota {dimensions = array<i32: 1>} : vector<8x128xi32>
    %18 = vector.broadcast %10 : vector<8x1xf32> to vector<8x128xf32>
    %19 = arith.cmpf oeq, %8, %18 : vector<8x128xf32>
    %c128_i32 = arith.constant 128 : i32
    %20 = vector.broadcast %c128_i32 : i32 to vector<8x128xi32>
    %21 = arith.select %19, %17, %20 : vector<8x128xi1>, vector<8x128xi32>
    %cst_10 = arith.constant dense<2147483647> : vector<8xi32>
    %22 = vector.multi_reduction <minsi>, %21, %cst_10 [1] : vector<8x128xi32> to vector<8xi32>
    %23 = vector.shape_cast %22 : vector<8xi32> to vector<8x1xi32>
    %24 = tpu.iota {dimensions = array<i32: 1>} : vector<8x2xi32>
    %c0_i32 = arith.constant 0 : i32
    %25 = vector.broadcast %c0_i32 : i32 to vector<8x2xi32>
    %26 = arith.cmpi eq, %24, %25 : vector<8x2xi32>
    %27 = arith.sitofp %23 : vector<8x1xi32> to vector<8x1xf32>
    %28 = vector.shape_cast %27 : vector<8x1xf32> to vector<8x1xf32>
    %29 = vector.broadcast %28 : vector<8x1xf32> to vector<8x2xf32>
    %30 = vector.shape_cast %16 : vector<8x1xf32> to vector<8x1xf32>
    %31 = vector.broadcast %30 : vector<8x1xf32> to vector<8x2xf32>
    %32 = arith.select %26, %29, %31 : vector<8x2xi1>, vector<8x2xf32>
    %c0_11 = arith.constant 0 : index
    %c0_12 = arith.constant 0 : index
    %33 = vector.load %arg4[%c0_11, %c0_12] : memref<8x2xf32, #tpu.memory_space<vmem>>, vector<8x2xf32>
    tpu.vector_store %arg4[%c0_11, %c0_12], %32 {strides = array<i32>} : memref<8x2xf32, #tpu.memory_space<vmem>>, vector<8x2xf32>,
    return
  }
  func.func @transform_0(%arg0: i32) -> (i32, i32, i32) {
    %c0_i32 = arith.constant 0 : i32
    %c0_i32_0 = arith.constant 0 : i32
    %c0_i32_1 = arith.constant 0 : i32
    return %arg0, %c0_i32, %c0_i32_0 : i32, i32, i32
  }
  func.func @transform_1(%arg0: i32) -> (i32, i32) {
    %c0_i32 = arith.constant 0 : i32
    %c0_i32_0 = arith.constant 0 : i32
    %c0_i32_1 = arith.constant 0 : i32
    return %c0_i32, %c0_i32_0 : i32, i32
  }
  func.func @transform_2(%arg0: i32) -> (i32, i32) {
    %c0_i32 = arith.constant 0 : i32
    %c0_i32_0 = arith.constant 0 : i32
    %c0_i32_1 = arith.constant 0 : i32
    return %c0_i32, %c0_i32_0 : i32, i32
  }
  func.func @transform_3(%arg0: i32) -> (i32, i32) {
    %c0_i32 = arith.constant 0 : i32
    %c0_i32_0 = arith.constant 0 : i32
    return %arg0, %c0_i32 : i32, i32
  }
}

</mosaic_0001>

<bundles_post_ra>
// kernel: tpu_custom_call.1
= control target key start
LH: loop header
LB: loop body
LE: loop exit
PB: predicated region body
PF: predicated region fallthrough
CT: control target
= control target key end

     0   :  { %8 = vsyncpa [#allocation3], 0  ;;  %s835_s0 = inlined_call_operand.hbm [shape: f32[32,4,256], index: 0, kind: input, shape index: {}]   ;;  %s836_s1 = inlined_call_operand.hbm [shape: f32[4,128], index: 1, kind: input, shape index: {}]   ;;  %s837_s2 = inlined_call_operand.vmem [shape: f32[1,128], index: 2, kind: input, shape index: {}]   ;;  %s838_s3 = inlined_call_operand.vmem [shape: f32[32,2], index: 3, kind: output, shape index: {}]  }
   0x1   :  { %10 = vsyncpa [#allocation3 + $0x1], 0 }
   0x2   :  { %11 = vsyncpa [#allocation5], 0  ;;  %s694_s12 = smov 0   ;;  %s696_s13 = smov 0  }
   0x3   :  { %s698_s14 = smov 0   ;;  %s700_s15 = smov 0  }
   0x4 LB: > { %s713_s16 = sadd.s32 4294967295, %s669_s15   ;;  %s716_s17 = sadd.s32 1, %s669_s15   ;;  %s669_s15 = sphi %s700_s15, %s846_s15   ;;  %s665_s14 = sphi %s698_s14, %s845_s14   ;;  %s661_s13 = sphi %s696_s13, %s844_s13   ;;  %s657_s12 = sphi %s694_s12, %s843_s12  }
   0x5   : > { %s21_s18 = ssub.s32 %s669_s15, %s716_s17  ;;  %s24_s19 = sadd.s32 1, %s665_s14 }
   0x6   : > { %p22_p0 = scmp.eq.s32.totalorder %s21_s18, 0  ;;  %p31_p1 = scmp.ne.s32.totalorder %s665_s14, %s661_s13 }
   0x7   : > { %p32_p2 = scmp.eq.s32.totalorder %s669_s15, 0  ;;  %p37_p3 = scmp.ne.s32.totalorder %s661_s13, %s657_s12 }
   0x8   : > { %s726_s20 = scalar_select %p22_p0, %s665_s14, %s24_s19  }
   0x9   : > { %p728_p4 = por %p32_p2, %p31_p1  ;;  %p38_p5 = scmp.eq.s32.totalorder %s713_s16, 0 }
   0xa   : > { %p497_p6 = scmp.ge.s32.totalorder %s669_s15, 1  ;;  %p116_p7 = scmp.lt.s32.totalorder %s669_s15, 5 }
   0xb   : > { %p737_p8 = por %p38_p5, %p37_p3  ;;  %s128_s26 = sshll.u32 %s836_s1, 4  ;;  %s129_s26 = int_to_ptr.hbm [resolvable:$true] %s128_s26 }
   0xc   : > { %p741_p9 = pnand %p497_p6, %p116_p7  ;;  %s671_s27 = smov [#allocation4]  }
   0xd   : > { %s130_s28 = sshll.u32 %s671_s27, 4  ;;  %p529_p12 = scmp.lt.s32.totalorder %s669_s15, 4  ;;  %s131_s28 = int_to_ptr.vmem [resolvable:$true] %s130_s28 }
   0xe   : > { %p520_p10 = pneg %p741_p9  ;;  %s144_s29 = sand.u32 1, %s665_s14  }
   0xf   : > { %s513_s30 = sshll.u32 %s669_s15, 6  ;;  %p757_p13 = pnand %p529_p12, %p728_p4 }
  0x10   : > { %p521_p11 = pnand %p520_p10, %p38_p5  ;;  %s500_s5 = sshll.u32 %s144_s29, 6 }
  0x11   : > { %s154_s8 = scalar_lea.hbm %s835_s0, %s513_s30  ;;  %s148_s10 = scalar_lea.vmem [#allocation2], %s500_s5 }
  0x12   : > { %523 = dma.hbm_to_vmem [thread:$0]  (!%p521_p11), %s129_s26, 64, %s131_s28, [#allocation5]  }
  0x13   : > { %s155_s9 = sshll.u32 %s154_s8, 4  ;;  %s157_s11 = sshll.u32 %s148_s10, 4  ;;  %s156_s9 = int_to_ptr.hbm [resolvable:$true] %s155_s9  ;;  %s158_s11 = int_to_ptr.vmem [resolvable:$true] %s157_s11 }
  0x14   : > { %s145_s12 = scalar_lea.sflag [#allocation3], %s144_s29  ;;  %s601_s18 = sshra.s32 %s156_s9, 4  ;;  %s602_s18 = int_to_ptr.hbm [resolvable:$true] %s601_s18 }
  0x15   : > { %s603_s15 = scalar_lea.hbm %s602_s18, 64  ;;  %p605_p1 = pneg %p757_p13 }
  0x16   : > { %p604_p0 = scmp.ne.s32.totalorder %s602_s18, %s603_s15  ;;  %s608_s24 = scalar_lea.hbm %s835_s0, 256 }
  0x17   : > { %p609_p4 = scmp.lt.s32.totalorder %s602_s18, %s835_s0  ;;  %p610_p6 = scmp.lt.s32.totalorder %s608_s24, %s603_s15 }
  0x18   : > { %p606_p2 = pnand %p605_p1, %p604_p0 }
  0x19   : > { %p611_p7 = por %p610_p6, %p609_p4 }
  0x1a   : > { %p607_p3 = pneg %p606_p2 }
  0x1c   : > { %p612_p10 = pnand %p611_p7, %p607_p3 }
  0x1e   : > { %615 = shalt.err (!%p612_p10)
}
  0x1f   : > { %s672_s27 = smov 128   ;;  %s673_s28 = smov 8  }
  0x20   : > { %527 = dma.hbm_to_vmem [thread:$0]  (!%p757_p13), %s156_s9, 1024, %s158_s11, %s145_s12, %s672_s27, %s672_s27, %s673_s28  }
  0x21   : > { %169 = sbr.rel (%p741_p9) target bundleno = 684 (0x2ac), region = 32  ;;  %s171_s29 = sand.u32 (!%p741_p9), 1, %s661_s13  }
  0x22   : > { %s505_s30 = sshll.u32 (!%p741_p9), %s171_s29, 6  ;;  %s172_s5 = scalar_lea.sflag (!%p741_p9), [#allocation3], %s171_s29 }
  0x23   : > { %s175_s6 = scalar_lea.vmem (!%p741_p9), [#allocation2], %s505_s30 }
  0x26   : > { %648 = dma.done.wait (%p737_p8), %s172_s5, 1024  }
  0x27   : > { %650 = vsyncadd (%p737_p8), %s172_s5, 4294966272 }
  0x28   : > { %652 = dma.done.wait (%p38_p5), [#allocation5], 64  }
  0x29   : > { %654 = vsyncadd (%p38_p5), [#allocation5], 4294967232  ;;  %v208_v0 = vld [vmem:[%s175_s6] sm:$0xff]  ;;  %v210_v1 = vld [vmem:[%s175_s6 + $0x10] sm:$0xff]  ;;  %vm267_vm0 = vcmask 1043456   ;;  %v329_v51 = vlaneseq  ;;  %vm339_vm1 = vcmask 1041409  }
  0x2a   : > { %224 = vst [vmem:[#allocation1] ss:$2 sm:$0xff] %v208_v0  ;;  %v209_v2 = vld [vmem:[%s175_s6 + $0x8] sm:$0xff]  ;;  %v211_v3 = vld [vmem:[%s175_s6 + $0x18] sm:$0xff]  ;;  %v212_v4 = vld [vmem:[%s175_s6 + $0x20] sm:$0xff]  ;;  %vm341_vm2 = vcmask 1042434  }
  0x2b   : > { %232 = vst [vmem:[#allocation1 + $0x20] ss:$2 sm:$0xff] %v210_v1  ;;  %v214_v5 = vld [vmem:[%s175_s6 + $0x30] sm:$0xff]  ;;  %v213_v10 = vld [vmem:[%s175_s6 + $0x28] sm:$0xff]  ;;  %v215_v16 = vld [vmem:[%s175_s6 + $0x38] sm:$0xff]  ;;  %v802_v52 = vand.u32 127, %v329_v51 }
  0x2c   : > { %228 = vst [vmem:[#allocation1 + $0x10] ss:$2 sm:$0xff] %v209_v2  ;;  %v316_v48 = vld [vmem:[#allocation4] sm:$0xf]  ;;  %vm343_vm3 = vcmask 1043459   ;;  %vm345_vm4 = vcmask 1044484  }
  0x2d   : > { %236 = vst [vmem:[#allocation1 + $0x30] ss:$2 sm:$0xff] %v211_v3  ;;  %508 = vmatpush.msk.msra.mxu0 %vm267_vm0, %v316_v48  ;;  %vm347_vm5 = vcmask 1045509   ;;  %vm349_vm6 = vcmask 1046534   ;;  %vm351_vm7 = vcmask 1047559   ;;  %vm353_vm8 = vcmask 31744  }
  0x2e   : > { %p204_p5 = scmp.lt.s32.totalorder %s713_s16, 3  ;;  %vm416_vm14 = vcmp.eq.s32.totalorder %v802_v52, 0 }
  0x30   : > { %s848_s16 = smov (!%p204_p5, %s713_s16), 3 }
  0x31   : > { %v225_v6 = vld.sshfl [vmem:[#allocation1] sm:$0xff pattern:$0x75316420]  ;;  %v226_v7 = vld.sshfl [vmem:[#allocation1 + $0x8] sm:$0xff pattern:$0x75316420] }
  0x32   : > { %v268_v8 = vsel %vm267_vm0, %v225_v6, 0.0  ;;  %v269_v9 = vsel %vm267_vm0, %v226_v7, 0.0  ;;  %239 = vst [vmem:[#allocation1] ss:$2 sm:$0xff] %v212_v4  ;;  %s507_s4 = sshll.u32 %s848_s16, 3 }
  0x33   : > { %v270_v11 = vadd.f32 %v269_v9, %v268_v8  ;;  %v233_v12 = vld.sshfl [vmem:[#allocation1 + $0x20] sm:$0xff pattern:$0x75316420]  ;;  %v234_v13 = vld.sshfl [vmem:[#allocation1 + $0x28] sm:$0xff pattern:$0x75316420]  ;;  %s207_s9 = scalar_lea.vmem %s838_s3, %s507_s4 }
  0x34   : > { %v278_v14 = vsel %vm267_vm0, %v233_v12, 0.0  ;;  %v279_v15 = vsel %vm267_vm0, %v234_v13, 0.0  ;;  %245 = vst [vmem:[#allocation1 + $0x20] ss:$2 sm:$0xff] %v214_v5 }
  0x35   : > { %271 = vadd.xlane.f32.xlu0 %v270_v11  ;;  %v280_v17 = vadd.f32 %v279_v15, %v278_v14  ;;  %v229_v18 = vld.sshfl [vmem:[#allocation1 + $0x10] sm:$0xff pattern:$0x75316420]  ;;  %v230_v19 = vld.sshfl [vmem:[#allocation1 + $0x18] sm:$0xff pattern:$0x75316420] }
  0x36   : > { %242 = vst [vmem:[#allocation1 + $0x10] ss:$2 sm:$0xff] %v213_v10  ;;  %v273_v20 = vsel %vm267_vm0, %v229_v18, 0.0  ;;  %v274_v21 = vsel %vm267_vm0, %v230_v19, 0.0  ;;  %v566_v18 = vld [vmem:[%s837_s2] ss:$0 sm:$0xff] }
  0x37   : > { %281 = vadd.xlane.f32.xlu1 %v280_v17  ;;  %v237_v22 = vld.sshfl [vmem:[#allocation1 + $0x30] sm:$0xff pattern:$0x75316420]  ;;  %v238_v23 = vld.sshfl [vmem:[#allocation1 + $0x38] sm:$0xff pattern:$0x75316420]  ;;  %v275_v26 = vadd.f32 %v274_v21, %v273_v20 }
  0x38   : > { %248 = vst [vmem:[#allocation1 + $0x30] ss:$2 sm:$0xff] %v215_v16  ;;  %v283_v24 = vsel %vm267_vm0, %v237_v22, 0.0  ;;  %v284_v25 = vsel %vm267_vm0, %v238_v23, 0.0 }
  0x39   : > { %v240_v27 = vld.sshfl [vmem:[#allocation1] sm:$0xff pattern:$0x75316420]  ;;  %v241_v28 = vld.sshfl [vmem:[#allocation1 + $0x8] sm:$0xff pattern:$0x75316420]  ;;  %v285_v32 = vadd.f32 %v284_v25, %v283_v24 }
  0x3a   : > { %v288_v29 = vsel %vm267_vm0, %v240_v27, 0.0  ;;  %v289_v30 = vsel %vm267_vm0, %v241_v28, 0.0 }
  0x3b   : > { %v290_v31 = vadd.f32 %v289_v30, %v288_v29  ;;  %v246_v33 = vld.sshfl [vmem:[#allocation1 + $0x20] sm:$0xff pattern:$0x75316420]  ;;  %v247_v34 = vld.sshfl [vmem:[#allocation1 + $0x28] sm:$0xff pattern:$0x75316420] }
  0x3c   : > { %v298_v39 = vsel %vm267_vm0, %v246_v33, 0.0  ;;  %v299_v40 = vsel %vm267_vm0, %v247_v34, 0.0 }
  0x3d   : > { %276 = vadd.xlane.f32.xlu0 %v275_v26  ;;  %291 = vadd.xlane.f32.xlu2 %v290_v31  ;;  %v243_v35 = vld.sshfl [vmem:[#allocation1 + $0x10] sm:$0xff pattern:$0x75316420]  ;;  %v244_v36 = vld.sshfl [vmem:[#allocation1 + $0x18] sm:$0xff pattern:$0x75316420]  ;;  %v300_v46 = vadd.f32 %v299_v40, %v298_v39 }
  0x3e   : > { %v293_v37 = vsel %vm267_vm0, %v243_v35, 0.0  ;;  %v294_v38 = vsel %vm267_vm0, %v244_v36, 0.0 }
  0x3f   : > { %286 = vadd.xlane.f32.xlu1 %v285_v32  ;;  %v249_v41 = vld.sshfl [vmem:[#allocation1 + $0x30] sm:$0xff pattern:$0x75316420]  ;;  %v250_v42 = vld.sshfl [vmem:[#allocation1 + $0x38] sm:$0xff pattern:$0x75316420]  ;;  %v295_v45 = vadd.f32 %v294_v38, %v293_v37 }
  0x40   : > { %v303_v43 = vsel %vm267_vm0, %v249_v41, 0.0  ;;  %v304_v44 = vsel %vm267_vm0, %v250_v42, 0.0  ;;  %vm419_vm0 = vcmask 15360  }
  0x41   : > { %v305_v47 = vadd.f32 %v304_v44, %v303_v43 }
  0x45   : > { %296 = vadd.xlane.f32.xlu2 %v295_v45  ;;  %301 = vadd.xlane.f32.xlu0 %v300_v46 }
  0x47   : > { %306 = vadd.xlane.f32.xlu1 %v305_v47 }
  0xa8   : > { %v272_v49 = vpop.xlane.xlu0 %271 }
  0xa9   : > { %v308_v53 = vmul.f32 0.00390625, %v272_v49 }
  0xaa   : > { %v282_v50 = vpop.xlane.xlu1 %281 }
  0xab   : > { %v310_v54 = vmul.f32 0.00390625, %v282_v50  ;;  %v331_v59 = vperm.slane %v308_v53, %v802_v52 }
  0xad   : > { %v333_v62 = vperm.slane %v310_v54, %v802_v52 }
  0xb0   : > { %v277_v55 = vpop.xlane.xlu0 %276  ;;  %v292_v56 = vpop.xlane.xlu2 %291 }
  0xb1   : > { %v309_v57 = vmul.f32 0.00390625, %v277_v55  ;;  %v312_v1 = vmul.f32 0.00390625, %v292_v56 }
  0xb2   : > { %v287_v58 = vpop.xlane.xlu1 %286 }
  0xb3   : > { %v332_v60 = vperm.slane %v309_v57, %v802_v52  ;;  %v311_v61 = vmul.f32 0.00390625, %v287_v58  ;;  %v335_v8 = vperm.slane %v312_v1, %v802_v52 }
  0xb5   : > { %v340_v63 = vsel %vm339_vm1, %v332_v60, %v331_v59  ;;  %v334_v0 = vperm.slane %v311_v61, %v802_v52 }
  0xb6   : > { %v342_v2 = vsel %vm341_vm2, %v333_v62, %v340_v63 }
  0xb7   : > { %v344_v5 = vsel %vm343_vm3, %v334_v0, %v342_v2 }
  0xb8   : > { %v297_v3 = vpop.xlane.xlu2 %296  ;;  %v302_v4 = vpop.xlane.xlu0 %301  ;;  %v346_v13 = vsel %vm345_vm4, %v335_v8, %v344_v5 }
  0xb9   : > { %v313_v6 = vmul.f32 0.00390625, %v297_v3  ;;  %v314_v7 = vmul.f32 0.00390625, %v302_v4 }
  0xba   : > { %v307_v9 = vpop.xlane.xlu1 %306 }
  0xbb   : > { %v336_v10 = vperm.slane %v313_v6, %v802_v52  ;;  %v337_v11 = vperm.slane %v314_v7, %v802_v52  ;;  %v315_v12 = vmul.f32 0.00390625, %v307_v9 }
  0xbd   : > { %v338_v14 = vperm.slane %v315_v12, %v802_v52  ;;  %v348_v15 = vsel %vm347_vm5, %v336_v10, %v346_v13 }
  0xbe   : > { %v350_v16 = vsel %vm349_vm6, %v337_v11, %v348_v15 }
  0xbf   : > { %v352_v17 = vsel %vm351_vm7, %v338_v14, %v350_v16 }
  0xc0   : > { %509 = vmatmul.msk.f32.vlgmr.msra.gmra.mxu0 %vm353_vm8, %v352_v17 }
 0x13d   : > { %v376_v19 = vpop.f32.mrf.mxu0 }
 0x13e   : > { %v377_v20 = vadd.f32 %v566_v18, %v376_v19 }
 0x140   : > { %379 = vmax.xlane.f32.xlu2 %v377_v20 }
 0x1b3   : > { %v380_v21 = vpop.xlane.xlu2 %379 }
 0x1b4   : > { %v381_v22 = vsub.f32 %v377_v20, %v380_v21  ;;  %vm400_vm9 = vcmp.eq.f32.partialorder %v377_v20, %v380_v21 }
 0x1b5   : > { %v401_v23 = vsel %vm400_vm9, %v802_v52, 128 }
 0x1b6   : > { %v382_v24 = vmul.f32 1.442695, %v381_v22  ;;  %v403_v25 = vshra.s32 %v401_v23, 16  ;;  %v402_v28 = vand.u32 65535, %v401_v23 }
 0x1b8   : > { %567 = vpow2.f32 %v382_v24  ;;  %v405_v26 = vcvt.s32.f32 %v403_v25  ;;  %v404_v30 = vcvt.s32.f32 %v402_v28 }
 0x1ba   : > { %406 = vmin.xlane.f32.xlu0 %v405_v26 }
 0x1be   : > { %v568_v27 = vpop.eup %567 }
 0x1bf   : > { %384 = vadd.xlane.f32.xlu1 %v568_v27 }
 0x22d   : > { %v407_v29 = vpop.xlane.xlu0 %406 }
 0x22e   : > { %vm408_vm10 = vcmp.eq.f32.partialorder %v405_v26, %v407_v29  ;;  %v413_v37 = vcvt.f32.s32 %v407_v29 }
 0x22f   : > { %v409_v31 = vsel %vm408_vm10, %v404_v30, inf }
 0x230   : > { %410 = vmin.xlane.f32.xlu2 %v409_v31  ;;  %v414_v41 = vshll.u32 %v413_v37, 16 }
 0x232   : > { %v385_v32 = vpop.xlane.xlu1 %384 }
 0x233   : > { %569 = vrcp.f32 %v385_v32  ;;  %v397_v39 = vand.u32 2147483648, %v385_v32  ;;  %vm391_vm12 = vweird.f32 %v385_v32  ;;  %v395_v42 = vand.u32 2147483647, %v385_v32 }
 0x235   : > { %v398_v46 = vor.u32 1.1754944e-38, %v397_v39  ;;  %vm396_vm15 = vcmp.eq.f32.partialorder %v395_v42, 8.507059e+37 }
 0x239   : > { %v570_v33 = vpop.eup %569 }
 0x23a   : > { %v387_v34 = vmul.f32 %v570_v33, %v385_v32  ;;  %vm392_vm11 = vweird.f32 %v570_v33 }
 0x23b   : > { %vm393_vm13 = vmor %vm391_vm12, %vm392_vm11 }
 0x23c   : > { %v388_v35 = vsub.f32 1.0, %v387_v34 }
 0x23e   : > { %v389_v36 = vmul.f32 %v570_v33, %v388_v35 }
 0x240   : > { %v390_v38 = vadd.f32 %v570_v33, %v389_v36 }
 0x242   : > { %v394_v44 = vsel %vm393_vm13, %v570_v33, %v390_v38 }
 0x243   : > { %v399_v48 = vsel %vm396_vm15, %v398_v46, %v394_v44 }
 0x2a3   : > { %v411_v40 = vpop.xlane.xlu2 %410 }
 0x2a4   : > { %v412_v43 = vcvt.f32.s32 %v411_v40 }
 0x2a6   : > { %v415_v45 = vadd.s32 %v414_v41, %v412_v43 }
 0x2a8   : > { %v417_v47 = vcvt.s32.f32 %v415_v45 }
 0x2aa   : > { %v418_v49 = vsel %vm416_vm14, %v417_v47, %v399_v48 }
 0x2ab   : > { %420 = vst.msk [vmem:[%s207_s9] sm:$0xff] %vm419_vm0, %v418_v49 }
 0x2ac PF: > { %p14_p8 = scmp.ge.s32.totalorder %s716_s17, 6   ;;  %s843_s12 = smov %s661_s13 }
 0x2ad   : > { %s844_s13 = smov %s665_s14  ;;  %s845_s14 = smov %s726_s20 }
 0x2ae   : > { %s846_s15 = smov %s716_s17  ;;  %16 = sbr.rel (!%p14_p8) target bundleno = 4 (0x4), region = 79 }
 0x2b3   :  { %440 = vsyncpa [#allocation3], 1 }
 0x2b4   :  { %442 = vsyncpa [#allocation3 + $0x1], 1 }
 0x2b5   :  { %443 = vsyncpa [#allocation5], 1 }

// kernel: tpu_custom_call.1
= control target key start
LH: loop header
LB: loop body
LE: loop exit
PB: predicated region body
PF: predicated region fallthrough
CT: control target
= control target key end

     0   :  { %8 = vsyncpa [#allocation3], 0  ;;  %s835_s0 = inlined_call_operand.hbm [shape: f32[32,4,256], index: 0, kind: input, shape index: {}]   ;;  %s836_s1 = inlined_call_operand.hbm [shape: f32[4,128], index: 1, kind: input, shape index: {}]   ;;  %s837_s2 = inlined_call_operand.vmem [shape: f32[1,128], index: 2, kind: input, shape index: {}]   ;;  %s838_s3 = inlined_call_operand.vmem [shape: f32[32,2], index: 3, kind: output, shape index: {}]  }
   0x1   :  { %10 = vsyncpa [#allocation3 + $0x1], 0 }
   0x2   :  { %11 = vsyncpa [#allocation5], 0  ;;  %s694_s12 = smov 0   ;;  %s696_s13 = smov 0  }
   0x3   :  { %s698_s14 = smov 0   ;;  %s700_s15 = smov 0  }
   0x4 LB: > { %s713_s16 = sadd.s32 4294967295, %s669_s15   ;;  %s716_s17 = sadd.s32 1, %s669_s15   ;;  %s669_s15 = sphi %s700_s15, %s846_s15   ;;  %s665_s14 = sphi %s698_s14, %s845_s14   ;;  %s661_s13 = sphi %s696_s13, %s844_s13   ;;  %s657_s12 = sphi %s694_s12, %s843_s12  }
   0x5   : > { %s21_s18 = ssub.s32 %s669_s15, %s716_s17  ;;  %s24_s19 = sadd.s32 1, %s665_s14 }
   0x6   : > { %p22_p0 = scmp.eq.s32.totalorder %s21_s18, 0  ;;  %p31_p1 = scmp.ne.s32.totalorder %s665_s14, %s661_s13 }
   0x7   : > { %p32_p2 = scmp.eq.s32.totalorder %s669_s15, 0  ;;  %p37_p3 = scmp.ne.s32.totalorder %s661_s13, %s657_s12 }
   0x8   : > { %s726_s20 = scalar_select %p22_p0, %s665_s14, %s24_s19  }
   0x9   : > { %p728_p4 = por %p32_p2, %p31_p1  ;;  %p38_p5 = scmp.eq.s32.totalorder %s713_s16, 0 }
   0xa   : > { %p497_p6 = scmp.ge.s32.totalorder %s669_s15, 1  ;;  %p116_p7 = scmp.lt.s32.totalorder %s669_s15, 5 }
   0xb   : > { %p737_p8 = por %p38_p5, %p37_p3  ;;  %s128_s26 = sshll.u32 %s836_s1, 4  ;;  %s129_s26 = int_to_ptr.hbm [resolvable:$true] %s128_s26 }
   0xc   : > { %p741_p9 = pnand %p497_p6, %p116_p7  ;;  %s671_s27 = smov [#allocation4]  }
   0xd   : > { %s130_s28 = sshll.u32 %s671_s27, 4  ;;  %p529_p12 = scmp.lt.s32.totalorder %s669_s15, 4  ;;  %s131_s28 = int_to_ptr.vmem [resolvable:$true] %s130_s28 }
   0xe   : > { %p520_p10 = pneg %p741_p9  ;;  %s144_s29 = sand.u32 1, %s665_s14  }
   0xf   : > { %s513_s30 = sshll.u32 %s669_s15, 6  ;;  %p757_p13 = pnand %p529_p12, %p728_p4 }
  0x10   : > { %p521_p11 = pnand %p520_p10, %p38_p5  ;;  %s500_s5 = sshll.u32 %s144_s29, 6 }
  0x11   : > { %s154_s8 = scalar_lea.hbm %s835_s0, %s513_s30  ;;  %s148_s10 = scalar_lea.vmem [#allocation2], %s500_s5 }
  0x12   : > { %523 = dma.hbm_to_vmem [thread:$0]  (!%p521_p11), %s129_s26, 64, %s131_s28, [#allocation5]  }
  0x13   : > { %s155_s9 = sshll.u32 %s154_s8, 4  ;;  %s157_s11 = sshll.u32 %s148_s10, 4  ;;  %s156_s9 = int_to_ptr.hbm [resolvable:$true] %s155_s9  ;;  %s158_s11 = int_to_ptr.vmem [resolvable:$true] %s157_s11 }
  0x14   : > { %s145_s12 = scalar_lea.sflag [#allocation3], %s144_s29  ;;  %s601_s18 = sshra.s32 %s156_s9, 4  ;;  %s602_s18 = int_to_ptr.hbm [resolvable:$true] %s601_s18 }
  0x15   : > { %s603_s15 = scalar_lea.hbm %s602_s18, 64  ;;  %p605_p1 = pneg %p757_p13 }
  0x16   : > { %p604_p0 = scmp.ne.s32.totalorder %s602_s18, %s603_s15  ;;  %s608_s24 = scalar_lea.hbm %s835_s0, 256 }
  0x17   : > { %p609_p4 = scmp.lt.s32.totalorder %s602_s18, %s835_s0  ;;  %p610_p6 = scmp.lt.s32.totalorder %s608_s24, %s603_s15 }
  0x18   : > { %p606_p2 = pnand %p605_p1, %p604_p0 }
  0x19   : > { %p611_p7 = por %p610_p6, %p609_p4 }
  0x1a   : > { %p607_p3 = pneg %p606_p2 }
  0x1c   : > { %p612_p10 = pnand %p611_p7, %p607_p3 }
  0x1e   : > { %615 = shalt.err (!%p612_p10)
}
  0x1f   : > { %s672_s27 = smov 128   ;;  %s673_s28 = smov 8  }
  0x20   : > { %527 = dma.hbm_to_vmem [thread:$0]  (!%p757_p13), %s156_s9, 1024, %s158_s11, %s145_s12, %s672_s27, %s672_s27, %s673_s28  }
  0x21   : > { %169 = sbr.rel (%p741_p9) target bundleno = 684 (0x2ac), region = 32  ;;  %s171_s29 = sand.u32 (!%p741_p9), 1, %s661_s13  }
  0x22   : > { %s505_s30 = sshll.u32 (!%p741_p9), %s171_s29, 6  ;;  %s172_s5 = scalar_lea.sflag (!%p741_p9), [#allocation3], %s171_s29 }
  0x23   : > { %s175_s6 = scalar_lea.vmem (!%p741_p9), [#allocation2], %s505_s30 }
  0x26   : > { %648 = dma.done.wait (%p737_p8), %s172_s5, 1024  }
  0x27   : > { %650 = vsyncadd (%p737_p8), %s172_s5, 4294966272 }
  0x28   : > { %652 = dma.done.wait (%p38_p5), [#allocation5], 64  }
  0x29   : > { %654 = vsyncadd (%p38_p5), [#allocation5], 4294967232  ;;  %v208_v0 = vld [vmem:[%s175_s6] sm:$0xff]  ;;  %v210_v1 = vld [vmem:[%s175_s6 + $0x10] sm:$0xff]  ;;  %vm267_vm0 = vcmask 1043456   ;;  %v329_v51 = vlaneseq  ;;  %vm339_vm1 = vcmask 1041409  }
  0x2a   : > { %224 = vst [vmem:[#allocation1] ss:$2 sm:$0xff] %v208_v0  ;;  %v209_v2 = vld [vmem:[%s175_s6 + $0x8] sm:$0xff]  ;;  %v211_v3 = vld [vmem:[%s175_s6 + $0x18] sm:$0xff]  ;;  %v212_v4 = vld [vmem:[%s175_s6 + $0x20] sm:$0xff]  ;;  %vm341_vm2 = vcmask 1042434  }
  0x2b   : > { %232 = vst [vmem:[#allocation1 + $0x20] ss:$2 sm:$0xff] %v210_v1  ;;  %v214_v5 = vld [vmem:[%s175_s6 + $0x30] sm:$0xff]  ;;  %v213_v10 = vld [vmem:[%s175_s6 + $0x28] sm:$0xff]  ;;  %v215_v16 = vld [vmem:[%s175_s6 + $0x38] sm:$0xff]  ;;  %v802_v52 = vand.u32 127, %v329_v51 }
  0x2c   : > { %228 = vst [vmem:[#allocation1 + $0x10] ss:$2 sm:$0xff] %v209_v2  ;;  %v316_v48 = vld [vmem:[#allocation4] sm:$0xf]  ;;  %vm343_vm3 = vcmask 1043459   ;;  %vm345_vm4 = vcmask 1044484  }
  0x2d   : > { %236 = vst [vmem:[#allocation1 + $0x30] ss:$2 sm:$0xff] %v211_v3  ;;  %508 = vmatpush.msk.msra.mxu0 %vm267_vm0, %v316_v48  ;;  %vm347_vm5 = vcmask 1045509   ;;  %vm349_vm6 = vcmask 1046534   ;;  %vm351_vm7 = vcmask 1047559   ;;  %vm353_vm8 = vcmask 31744  }
  0x2e   : > { %p204_p5 = scmp.lt.s32.totalorder %s713_s16, 3  ;;  %vm416_vm14 = vcmp.eq.s32.totalorder %v802_v52, 0 }
  0x30   : > { %s848_s16 = smov (!%p204_p5, %s713_s16), 3 }
  0x31   : > { %v225_v6 = vld.sshfl [vmem:[#allocation1] sm:$0xff pattern:$0x75316420]  ;;  %v226_v7 = vld.sshfl [vmem:[#allocation1 + $0x8] sm:$0xff pattern:$0x75316420] }
  0x32   : > { %v268_v8 = vsel %vm267_vm0, %v225_v6, 0.0  ;;  %v269_v9 = vsel %vm267_vm0, %v226_v7, 0.0  ;;  %239 = vst [vmem:[#allocation1] ss:$2 sm:$0xff] %v212_v4  ;;  %s507_s4 = sshll.u32 %s848_s16, 3 }
  0x33   : > { %v270_v11 = vadd.f32 %v269_v9, %v268_v8  ;;  %v233_v12 = vld.sshfl [vmem:[#allocation1 + $0x20] sm:$0xff pattern:$0x75316420]  ;;  %v234_v13 = vld.sshfl [vmem:[#allocation1 + $0x28] sm:$0xff pattern:$0x75316420]  ;;  %s207_s9 = scalar_lea.vmem %s838_s3, %s507_s4 }
  0x34   : > { %v278_v14 = vsel %vm267_vm0, %v233_v12, 0.0  ;;  %v279_v15 = vsel %vm267_vm0, %v234_v13, 0.0  ;;  %245 = vst [vmem:[#allocation1 + $0x20] ss:$2 sm:$0xff] %v214_v5 }
  0x35   : > { %271 = vadd.xlane.f32.xlu0 %v270_v11  ;;  %v280_v17 = vadd.f32 %v279_v15, %v278_v14  ;;  %v229_v18 = vld.sshfl [vmem:[#allocation1 + $0x10] sm:$0xff pattern:$0x75316420]  ;;  %v230_v19 = vld.sshfl [vmem:[#allocation1 + $0x18] sm:$0xff pattern:$0x75316420] }
  0x36   : > { %242 = vst [vmem:[#allocation1 + $0x10] ss:$2 sm:$0xff] %v213_v10  ;;  %v273_v20 = vsel %vm267_vm0, %v229_v18, 0.0  ;;  %v274_v21 = vsel %vm267_vm0, %v230_v19, 0.0  ;;  %v566_v18 = vld [vmem:[%s837_s2] ss:$0 sm:$0xff] }
  0x37   : > { %281 = vadd.xlane.f32.xlu1 %v280_v17  ;;  %v237_v22 = vld.sshfl [vmem:[#allocation1 + $0x30] sm:$0xff pattern:$0x75316420]  ;;  %v238_v23 = vld.sshfl [vmem:[#allocation1 + $0x38] sm:$0xff pattern:$0x75316420]  ;;  %v275_v26 = vadd.f32 %v274_v21, %v273_v20 }
  0x38   : > { %248 = vst [vmem:[#allocation1 + $0x30] ss:$2 sm:$0xff] %v215_v16  ;;  %v283_v24 = vsel %vm267_vm0, %v237_v22, 0.0  ;;  %v284_v25 = vsel %vm267_vm0, %v238_v23, 0.0 }
  0x39   : > { %v240_v27 = vld.sshfl [vmem:[#allocation1] sm:$0xff pattern:$0x75316420]  ;;  %v241_v28 = vld.sshfl [vmem:[#allocation1 + $0x8] sm:$0xff pattern:$0x75316420]  ;;  %v285_v32 = vadd.f32 %v284_v25, %v283_v24 }
  0x3a   : > { %v288_v29 = vsel %vm267_vm0, %v240_v27, 0.0  ;;  %v289_v30 = vsel %vm267_vm0, %v241_v28, 0.0 }
  0x3b   : > { %v290_v31 = vadd.f32 %v289_v30, %v288_v29  ;;  %v246_v33 = vld.sshfl [vmem:[#allocation1 + $0x20] sm:$0xff pattern:$0x75316420]  ;;  %v247_v34 = vld.sshfl [vmem:[#allocation1 + $0x28] sm:$0xff pattern:$0x75316420] }
  0x3c   : > { %v298_v39 = vsel %vm267_vm0, %v246_v33, 0.0  ;;  %v299_v40 = vsel %vm267_vm0, %v247_v34, 0.0 }
  0x3d   : > { %276 = vadd.xlane.f32.xlu0 %v275_v26  ;;  %291 = vadd.xlane.f32.xlu2 %v290_v31  ;;  %v243_v35 = vld.sshfl [vmem:[#allocation1 + $0x10] sm:$0xff pattern:$0x75316420]  ;;  %v244_v36 = vld.sshfl [vmem:[#allocation1 + $0x18] sm:$0xff pattern:$0x75316420]  ;;  %v300_v46 = vadd.f32 %v299_v40, %v298_v39 }
  0x3e   : > { %v293_v37 = vsel %vm267_vm0, %v243_v35, 0.0  ;;  %v294_v38 = vsel %vm267_vm0, %v244_v36, 0.0 }
  0x3f   : > { %286 = vadd.xlane.f32.xlu1 %v285_v32  ;;  %v249_v41 = vld.sshfl [vmem:[#allocation1 + $0x30] sm:$0xff pattern:$0x75316420]  ;;  %v250_v42 = vld.sshfl [vmem:[#allocation1 + $0x38] sm:$0xff pattern:$0x75316420]  ;;  %v295_v45 = vadd.f32 %v294_v38, %v293_v37 }
  0x40   : > { %v303_v43 = vsel %vm267_vm0, %v249_v41, 0.0  ;;  %v304_v44 = vsel %vm267_vm0, %v250_v42, 0.0  ;;  %vm419_vm0 = vcmask 15360  }
  0x41   : > { %v305_v47 = vadd.f32 %v304_v44, %v303_v43 }
  0x45   : > { %296 = vadd.xlane.f32.xlu2 %v295_v45  ;;  %301 = vadd.xlane.f32.xlu0 %v300_v46 }
  0x47   : > { %306 = vadd.xlane.f32.xlu1 %v305_v47 }
  0xa8   : > { %v272_v49 = vpop.xlane.xlu0 %271 }
  0xa9   : > { %v308_v53 = vmul.f32 0.00390625, %v272_v49 }
  0xaa   : > { %v282_v50 = vpop.xlane.xlu1 %281 }
  0xab   : > { %v310_v54 = vmul.f32 0.00390625, %v282_v50  ;;  %v331_v59 = vperm.slane %v308_v53, %v802_v52 }
  0xad   : > { %v333_v62 = vperm.slane %v310_v54, %v802_v52 }
  0xb0   : > { %v277_v55 = vpop.xlane.xlu0 %276  ;;  %v292_v56 = vpop.xlane.xlu2 %291 }
  0xb1   : > { %v309_v57 = vmul.f32 0.00390625, %v277_v55  ;;  %v312_v1 = vmul.f32 0.00390625, %v292_v56 }
  0xb2   : > { %v287_v58 = vpop.xlane.xlu1 %286 }
  0xb3   : > { %v332_v60 = vperm.slane %v309_v57, %v802_v52  ;;  %v311_v61 = vmul.f32 0.00390625, %v287_v58  ;;  %v335_v8 = vperm.slane %v312_v1, %v802_v52 }
  0xb5   : > { %v340_v63 = vsel %vm339_vm1, %v332_v60, %v331_v59  ;;  %v334_v0 = vperm.slane %v311_v61, %v802_v52 }
  0xb6   : > { %v342_v2 = vsel %vm341_vm2, %v333_v62, %v340_v63 }
  0xb7   : > { %v344_v5 = vsel %vm343_vm3, %v334_v0, %v342_v2 }
  0xb8   : > { %v297_v3 = vpop.xlane.xlu2 %296  ;;  %v302_v4 = vpop.xlane.xlu0 %301  ;;  %v346_v13 = vsel %vm345_vm4, %v335_v8, %v344_v5 }
  0xb9   : > { %v313_v6 = vmul.f32 0.00390625, %v297_v3  ;;  %v314_v7 = vmul.f32 0.00390625, %v302_v4 }
  0xba   : > { %v307_v9 = vpop.xlane.xlu1 %306 }
  0xbb   : > { %v336_v10 = vperm.slane %v313_v6, %v802_v52  ;;  %v337_v11 = vperm.slane %v314_v7, %v802_v52  ;;  %v315_v12 = vmul.f32 0.00390625, %v307_v9 }
  0xbd   : > { %v338_v14 = vperm.slane %v315_v12, %v802_v52  ;;  %v348_v15 = vsel %vm347_vm5, %v336_v10, %v346_v13 }
  0xbe   : > { %v350_v16 = vsel %vm349_vm6, %v337_v11, %v348_v15 }
  0xbf   : > { %v352_v17 = vsel %vm351_vm7, %v338_v14, %v350_v16 }
  0xc0   : > { %509 = vmatmul.msk.f32.vlgmr.msra.gmra.mxu0 %vm353_vm8, %v352_v17 }
 0x13d   : > { %v376_v19 = vpop.f32.mrf.mxu0 }
 0x13e   : > { %v377_v20 = vadd.f32 %v566_v18, %v376_v19 }
 0x140   : > { %379 = vmax.xlane.f32.xlu2 %v377_v20 }
 0x1b3   : > { %v380_v21 = vpop.xlane.xlu2 %379 }
 0x1b4   : > { %v381_v22 = vsub.f32 %v377_v20, %v380_v21  ;;  %vm400_vm9 = vcmp.eq.f32.partialorder %v377_v20, %v380_v21 }
 0x1b5   : > { %v401_v23 = vsel %vm400_vm9, %v802_v52, 128 }
 0x1b6   : > { %v382_v24 = vmul.f32 1.442695, %v381_v22  ;;  %v403_v25 = vshra.s32 %v401_v23, 16  ;;  %v402_v28 = vand.u32 65535, %v401_v23 }
 0x1b8   : > { %567 = vpow2.f32 %v382_v24  ;;  %v405_v26 = vcvt.s32.f32 %v403_v25  ;;  %v404_v30 = vcvt.s32.f32 %v402_v28 }
 0x1ba   : > { %406 = vmin.xlane.f32.xlu0 %v405_v26 }
 0x1be   : > { %v568_v27 = vpop.eup %567 }
 0x1bf   : > { %384 = vadd.xlane.f32.xlu1 %v568_v27 }
 0x22d   : > { %v407_v29 = vpop.xlane.xlu0 %406 }
 0x22e   : > { %vm408_vm10 = vcmp.eq.f32.partialorder %v405_v26, %v407_v29  ;;  %v413_v37 = vcvt.f32.s32 %v407_v29 }
 0x22f   : > { %v409_v31 = vsel %vm408_vm10, %v404_v30, inf }
 0x230   : > { %410 = vmin.xlane.f32.xlu2 %v409_v31  ;;  %v414_v41 = vshll.u32 %v413_v37, 16 }
 0x232   : > { %v385_v32 = vpop.xlane.xlu1 %384 }
 0x233   : > { %569 = vrcp.f32 %v385_v32  ;;  %v397_v39 = vand.u32 2147483648, %v385_v32  ;;  %vm391_vm12 = vweird.f32 %v385_v32  ;;  %v395_v42 = vand.u32 2147483647, %v385_v32 }
 0x235   : > { %v398_v46 = vor.u32 1.1754944e-38, %v397_v39  ;;  %vm396_vm15 = vcmp.eq.f32.partialorder %v395_v42, 8.507059e+37 }
 0x239   : > { %v570_v33 = vpop.eup %569 }
 0x23a   : > { %v387_v34 = vmul.f32 %v570_v33, %v385_v32  ;;  %vm392_vm11 = vweird.f32 %v570_v33 }
 0x23b   : > { %vm393_vm13 = vmor %vm391_vm12, %vm392_vm11 }
 0x23c   : > { %v388_v35 = vsub.f32 1.0, %v387_v34 }
 0x23e   : > { %v389_v36 = vmul.f32 %v570_v33, %v388_v35 }
 0x240   : > { %v390_v38 = vadd.f32 %v570_v33, %v389_v36 }
 0x242   : > { %v394_v44 = vsel %vm393_vm13, %v570_v33, %v390_v38 }
 0x243   : > { %v399_v48 = vsel %vm396_vm15, %v398_v46, %v394_v44 }
 0x2a3   : > { %v411_v40 = vpop.xlane.xlu2 %410 }
 0x2a4   : > { %v412_v43 = vcvt.f32.s32 %v411_v40 }
 0x2a6   : > { %v415_v45 = vadd.s32 %v414_v41, %v412_v43 }
 0x2a8   : > { %v417_v47 = vcvt.s32.f32 %v415_v45 }
 0x2aa   : > { %v418_v49 = vsel %vm416_vm14, %v417_v47, %v399_v48 }
 0x2ab   : > { %420 = vst.msk [vmem:[%s207_s9] sm:$0xff] %vm419_vm0, %v418_v49 }
 0x2ac PF: > { %p14_p8 = scmp.ge.s32.totalorder %s716_s17, 6   ;;  %s843_s12 = smov %s661_s13 }
 0x2ad   : > { %s844_s13 = smov %s665_s14  ;;  %s845_s14 = smov %s726_s20 }
 0x2ae   : > { %s846_s15 = smov %s716_s17  ;;  %16 = sbr.rel (!%p14_p8) target bundleno = 4 (0x4), region = 79 }
 0x2b3   :  { %440 = vsyncpa [#allocation3], 1 }
 0x2b4   :  { %442 = vsyncpa [#allocation3 + $0x1], 1 }
 0x2b5   :  { %443 = vsyncpa [#allocation5], 1 }

</bundles_post_ra>
